<compile_context>
chip_gen: v7x
topology: tpu7x:2x2x1
jax: 0.10.0
libtpu: 0.0.40
codegen_flags: <defaults>
</compile_context>

<pallas_src>
import functools

import jax
import jax.numpy as jnp
from jax.experimental import pallas as pl
from jax.experimental.pallas import tpu as pltpu

NEG_SLOPE = 0.2          # GATConv default negative_slope
MASK_VALUE = -1e30       # "-inf" for masked (non-edge) attention logits


# ---------------------------------------------------------------------------
# Pass 1: linear transform + per-node attention logits (single grid step).
# ---------------------------------------------------------------------------
def linear_logits_kernel(x_ref, w_ref, asrc_ref, adst_ref,
                         xw_ref, asrc_out_ref, adst_out_ref,
                         *, heads, out_channels):
    """x_ref [N,F_in], w_ref [F_in,H*C], asrc/adst_ref [1,H*C] flattened att vecs.

    Outputs: xw [N,H*C] f32, alpha_src [N,H] f32, alpha_dst [N,H] f32.
    """
    xw = jnp.dot(x_ref[...], w_ref[...], preferred_element_type=jnp.float32)
    xw_ref[...] = xw
    # Per-head logits on the VPU/XLU (multiply + cross-lane reduce) instead of
    # a 2-lane-wide MXU matmul.  H is small -> static unroll.
    for h in range(heads):
        c0 = h * out_channels
        c1 = c0 + out_channels
        xh = xw[:, c0:c1]                                         # [N, C]
        asrc_out_ref[:, h:h + 1] = jnp.sum(
            xh * asrc_ref[:, c0:c1], axis=-1, keepdims=True)      # [N, 1]
        adst_out_ref[:, h:h + 1] = jnp.sum(
            xh * adst_ref[:, c0:c1], axis=-1, keepdims=True)      # [N, 1]


# ---------------------------------------------------------------------------
# Pass 2: row-tiled masked softmax + attention aggregation.
# ---------------------------------------------------------------------------
def gat_attention_kernel(adj_ref, xw_ref, asrc_t_ref, adst_ref, bias_ref,
                         out_ref, acc_ref, *, heads, out_channels):
    """adj_ref [TM,N] int8, xw_ref [N,H*C] bf16, asrc_t_ref [H,N] f32,
    adst_ref [TM,H] f32, bias_ref [1,H*C] f32, out_ref [TM,H*C] f32,
    acc_ref VMEM scratch [TM,H*C] f32."""
    # Hoisted once per row tile: int8 -> f32 cast and additive mask
    # (0 on edges, MASK_VALUE off-edge).  No per-head re-compare / re-select.
    adjf = adj_ref[...].astype(jnp.float32)                       # [TM, N]
    neg = (1.0 - adjf) * MASK_VALUE                               # [TM, N]
    xw = xw_ref[...]                                              # [N, H*C] bf16
    adst = adst_ref[...]                                          # [TM, H]

    for h in range(heads):                                        # H small: unroll
        c0 = h * out_channels
        c1 = c0 + out_channels

        # e[i, j] = alpha_dst[i] + alpha_src[j] for edge j -> i.
        e = adst[:, h:h + 1] + asrc_t_ref[h:h + 1, :]             # [TM, N]
        e = jnp.where(e > 0, e, NEG_SLOPE * e)                    # LeakyReLU
        e = e + neg                                               # mask non-edges

        # Softmax over incoming edges (axis = source nodes).  Every row has a
        # self-loop, so the row max is a real logit and masked entries
        # underflow to exactly 0 in exp -- no second masking pass needed.
        m = jnp.max(e, axis=-1, keepdims=True)
        p = jnp.exp(e - m)
        denom = jnp.sum(p, axis=-1, keepdims=True)
        attn = p * pl.reciprocal(denom, approx=True)              # EUP vrcp
        # TODO(synk): attention dropout (training mode) omitted; eval semantics.

        # bf16 MXU operands, f32 accumulation.
        acc_ref[:, c0:c1] = jnp.dot(attn.astype(jnp.bfloat16), xw[:, c0:c1],
                                    preferred_element_type=jnp.float32)

    # Single lane-dense store of the full [TM, H*C] slab; bias added once.
    out_ref[...] = acc_ref[...] + bias_ref[...]


# ---------------------------------------------------------------------------
# Wrapper.
# ---------------------------------------------------------------------------
def gat_forward(x, adj_i8, w, att_src_row, att_dst_row, bias,
                *, heads, out_channels, tile_m=64):
    n, f_in = x.shape
    hc = heads * out_channels
    assert n % tile_m == 0, "demo assumes N divisible by the row tile"

    # Pass 1: xw + per-node logits (single cold step, whole-array blocks).
    lin_kern = functools.partial(
        linear_logits_kernel, heads=heads, out_channels=out_channels)
    xw, a_src, a_dst = pl.pallas_call(
        lin_kern,
        out_shape=(jax.ShapeDtypeStruct((n, hc), jnp.float32),
                   jax.ShapeDtypeStruct((n, heads), jnp.float32),
                   jax.ShapeDtypeStruct((n, heads), jnp.float32)),
        grid=(1,),
        in_specs=[pl.BlockSpec((n, f_in), lambda i: (0, 0)),
                  pl.BlockSpec((f_in, hc), lambda i: (0, 0)),
                  pl.BlockSpec((1, hc), lambda i: (0, 0)),
                  pl.BlockSpec((1, hc), lambda i: (0, 0))],
        out_specs=(pl.BlockSpec((n, hc), lambda i: (0, 0)),
                   pl.BlockSpec((n, heads), lambda i: (0, 0)),
                   pl.BlockSpec((n, heads), lambda i: (0, 0))),
    )(x, w, att_src_row, att_dst_row)

    # Wrapper-side layout plumbing (tiny XLA ops): bf16 MXU operand and
    # lane-major source logits so pass 2 broadcasts along lanes, not sublanes.
    xw_bf16 = xw.astype(jnp.bfloat16)
    a_src_t = a_src.T                                             # [H, N]

    num_tiles = pl.cdiv(n, tile_m)
    attn_kern = functools.partial(
        gat_attention_kernel, heads=heads, out_channels=out_channels)
    out = pl.pallas_call(
        attn_kern,
        out_shape=jax.ShapeDtypeStruct((n, hc), jnp.float32),
        grid=(num_tiles,),
        in_specs=[pl.BlockSpec((tile_m, n), lambda i: (i, 0)),      # adj row tile
                  pl.BlockSpec((n, hc), lambda i: (0, 0)),          # xw (resident)
                  pl.BlockSpec((heads, n), lambda i: (0, 0)),       # alpha_src^T
                  pl.BlockSpec((tile_m, heads), lambda i: (i, 0)),  # alpha_dst tile
                  pl.BlockSpec((1, hc), lambda i: (0, 0))],         # bias
        out_specs=pl.BlockSpec((tile_m, hc), lambda i: (i, 0)),
        scratch_shapes=[pltpu.VMEM((tile_m, hc), jnp.float32)],
        compiler_params=pltpu.CompilerParams(
            dimension_semantics=("parallel",)),   # independent row tiles
    )(adj_i8, xw_bf16, a_src_t, a_dst, bias)
    return out


# ---------------------------------------------------------------------------
# Pure-JAX dense reference of the same GATConv math (eval mode, f32).
# ---------------------------------------------------------------------------
def reference_gat(x, adj, w, att_src_row, att_dst_row, bias,
                  *, heads, out_channels):
    xw = x @ w
    mask = adj > 0
    outs = []
    for h in range(heads):
        c0, c1 = h * out_channels, (h + 1) * out_channels
        xh = xw[:, c0:c1]
        a_src = jnp.sum(xh * att_src_row[:, c0:c1], axis=-1)      # [N]
        a_dst = jnp.sum(xh * att_dst_row[:, c0:c1], axis=-1)      # [N]
        e = a_dst[:, None] + a_src[None, :]
        e = jnp.where(e > 0, e, NEG_SLOPE * e)
        e = jnp.where(mask, e, MASK_VALUE)
        p = jnp.exp(e - jnp.max(e, axis=-1, keepdims=True))
        p = jnp.where(mask, p, 0.0)
        attn = p / jnp.sum(p, axis=-1, keepdims=True)
        outs.append(attn @ xh)
    return jnp.concatenate(outs, axis=-1) + bias[0]


if __name__ == "__main__":
    # Small deterministic problem: N nodes, F_in features, H heads, C out chans.
    N, F_IN, HEADS, C = 128, 16, 2, 8
    TILE_M = 64                               # row tile (grid of 2 steps)
    M = 512                                   # number of directed edges
    HC = HEADS * C

    key = jax.random.PRNGKey(0)
    kx, ke, kw, ks, kd = jax.random.split(key, 5)

    # Node features [N, F_in].
    x = jax.random.normal(kx, (N, F_IN), dtype=jnp.float32)

    # edge_index [2, M]: unique directed edges (src row 0, dst row 1).
    perm = jax.random.permutation(ke, N * N)[:M]
    src = (perm // N).astype(jnp.int32)
    dst = (perm % N).astype(jnp.int32)
    edge_index = jnp.stack([src, dst], axis=0)

    # Dense int8 adjacency adj[dst, src] = 1, plus self loops (GATConv default).
    adj = jnp.zeros((N, N), dtype=jnp.int8)
    adj = adj.at[edge_index[1], edge_index[0]].set(1)
    adj = adj.at[jnp.arange(N), jnp.arange(N)].set(1)

    # Deterministic "glorot-like" parameter init (synthetic, no checkpoint).
    w_scale = (2.0 / (F_IN + HC)) ** 0.5
    w = jax.random.normal(kw, (F_IN, HC), dtype=jnp.float32) * w_scale
    a_scale = (2.0 / (1 + C)) ** 0.5
    att_src = jax.random.normal(ks, (HEADS, C), dtype=jnp.float32) * a_scale
    att_dst = jax.random.normal(kd, (HEADS, C), dtype=jnp.float32) * a_scale
    att_src_row = att_src.reshape(1, HC)      # flattened per-head att vectors
    att_dst_row = att_dst.reshape(1, HC)

    bias = jnp.zeros((1, HC), dtype=jnp.float32)   # GATConv bias init = zeros

    out = gat_forward(x, adj, w, att_src_row, att_dst_row, bias,
                      heads=HEADS, out_channels=C, tile_m=TILE_M)
    out = jax.block_until_ready(out)

    ref = reference_gat(x, adj, w, att_src_row, att_dst_row, bias,
                        heads=HEADS, out_channels=C)
    assert out.shape == (N, HC)
    # Tolerance loosened for bf16 MXU operands + approx reciprocal (~1e-3 rel).
    assert jnp.allclose(out, ref, atol=2e-2, rtol=2e-2), \
        f"max abs diff {jnp.max(jnp.abs(out - ref))}"

    print("KERNEL_OK")
</pallas_src>

<mosaic_0001>
module attributes {stable_mosaic.version = 11 : i64} {
  func.func @linear_logits_kernel(%arg0: i32, %arg1: memref<128x16xf32, #tpu.memory_space<vmem>>, %arg2: memref<16x16xf32, #tpu.memory_space<vmem>>, %arg3: memref<1x16xf32, #tpu.memory_space<vmem>>, %arg4: memref<1x16xf32, #tpu.memory_space<vmem>>, %arg5: memref<128x16xf32, #tpu.memory_space<vmem>>, %arg6: memref<128x2xf32, #tpu.memory_space<vmem>>, %arg7: memref<128x2xf32, #tpu.memory_space<vmem>>) attributes {dimension_semantics = [#tpu.dimension_semantics<arbitrary>], iteration_bounds = array<i64: 1>, scalar_prefetch = 0 : i64, scratch_operands = 0 : i64, tpu.core_type = #tpu.core_type<tc>, window_params = [{pipeline_mode = #tpu.pipeline_mode<synchronous>, transform_indices = @transform_0, window_bounds = array<i64: 128, 16>}, {pipeline_mode = #tpu.pipeline_mode<synchronous>, transform_indices = @transform_1, window_bounds = array<i64: 16, 16>}, {pipeline_mode = #tpu.pipeline_mode<synchronous>, transform_indices = @transform_2, window_bounds = array<i64: 1, 16>}, {pipeline_mode = #tpu.pipeline_mode<synchronous>, transform_indices = @transform_3, window_bounds = array<i64: 1, 16>}, {pipeline_mode = #tpu.pipeline_mode<synchronous>, transform_indices = @transform_4, window_bounds = array<i64: 128, 16>}, {pipeline_mode = #tpu.pipeline_mode<synchronous>, transform_indices = @transform_5, window_bounds = array<i64: 128, 2>}, {pipeline_mode = #tpu.pipeline_mode<synchronous>, transform_indices = @transform_6, window_bounds = array<i64: 128, 2>}]} {
    %c0 = arith.constant 0 : index
    %c0_0 = arith.constant 0 : index
    %0 = vector.load %arg1[%c0, %c0_0] : memref<128x16xf32, #tpu.memory_space<vmem>>, vector<128x16xf32>
    %c0_1 = arith.constant 0 : index
    %c0_2 = arith.constant 0 : index
    %1 = vector.load %arg2[%c0_1, %c0_2] : memref<16x16xf32, #tpu.memory_space<vmem>>, vector<16x16xf32>
    %cst = arith.constant dense<0.000000e+00> : vector<128x16xf32>
    %2 = tpu.matmul %0, %1, %cst {dimension_numbers = #tpu.dot_dimension_numbers<[1], [0], [0], [1], [0, 0, 1, 1], [], []>} : vector<128x16xf32>, vector<16x16xf32>, vector<128x16xf32> -> vector<128x16xf32>
    %c0_3 = arith.constant 0 : index
    %c0_4 = arith.constant 0 : index
    %3 = vector.load %arg5[%c0_3, %c0_4] : memref<128x16xf32, #tpu.memory_space<vmem>>, vector<128x16xf32>
    tpu.vector_store %arg5[%c0_3, %c0_4], %2 {strides = array<i32>} : memref<128x16xf32, #tpu.memory_space<vmem>>, vector<128x16xf32>,
    %4 = vector.extract_strided_slice %2 {offsets = [0, 0], sizes = [128, 8], strides = [1, 1]} : vector<128x16xf32> to vector<128x8xf32>
    %c0_5 = arith.constant 0 : index
    %c0_6 = arith.constant 0 : index
    %5 = vector.load %arg3[%c0_5, %c0_6] : memref<1x16xf32, #tpu.memory_space<vmem>>, vector<1x8xf32>
    %6 = vector.broadcast %5 : vector<1x8xf32> to vector<128x8xf32>
    %7 = arith.mulf %4, %6 : vector<128x8xf32>
    %cst_7 = arith.constant dense<0.000000e+00> : vector<128xf32>
    %8 = vector.multi_reduction <add>, %7, %cst_7 [1] : vector<128x8xf32> to vector<128xf32>
    %9 = vector.shape_cast %8 : vector<128xf32> to vector<128x1xf32>
    %c0_8 = arith.constant 0 : index
    %c0_9 = arith.constant 0 : index
    %10 = vector.load %arg6[%c0_8, %c0_9] : memref<128x2xf32, #tpu.memory_space<vmem>>, vector<128x1xf32>
    tpu.vector_store %arg6[%c0_8, %c0_9], %9 {strides = array<i32>} : memref<128x2xf32, #tpu.memory_space<vmem>>, vector<128x1xf32>,
    %c0_10 = arith.constant 0 : index
    %c0_11 = arith.constant 0 : index
    %11 = vector.load %arg4[%c0_10, %c0_11] : memref<1x16xf32, #tpu.memory_space<vmem>>, vector<1x8xf32>
    %12 = vector.broadcast %11 : vector<1x8xf32> to vector<128x8xf32>
    %13 = arith.mulf %4, %12 : vector<128x8xf32>
    %cst_12 = arith.constant dense<0.000000e+00> : vector<128xf32>
    %14 = vector.multi_reduction <add>, %13, %cst_12 [1] : vector<128x8xf32> to vector<128xf32>
    %15 = vector.shape_cast %14 : vector<128xf32> to vector<128x1xf32>
    %c0_13 = arith.constant 0 : index
    %c0_14 = arith.constant 0 : index
    %16 = vector.load %arg7[%c0_13, %c0_14] : memref<128x2xf32, #tpu.memory_space<vmem>>, vector<128x1xf32>
    tpu.vector_store %arg7[%c0_13, %c0_14], %15 {strides = array<i32>} : memref<128x2xf32, #tpu.memory_space<vmem>>, vector<128x1xf32>,
    %17 = vector.extract_strided_slice %2 {offsets = [0, 8], sizes = [128, 8], strides = [1, 1]} : vector<128x16xf32> to vector<128x8xf32>
    %c0_15 = arith.constant 0 : index
    %c8 = arith.constant 8 : index
    %18 = vector.load %arg3[%c0_15, %c8] : memref<1x16xf32, #tpu.memory_space<vmem>>, vector<1x8xf32>
    %19 = vector.broadcast %18 : vector<1x8xf32> to vector<128x8xf32>
    %20 = arith.mulf %17, %19 : vector<128x8xf32>
    %cst_16 = arith.constant dense<0.000000e+00> : vector<128xf32>
    %21 = vector.multi_reduction <add>, %20, %cst_16 [1] : vector<128x8xf32> to vector<128xf32>
    %22 = vector.shape_cast %21 : vector<128xf32> to vector<128x1xf32>
    %c0_17 = arith.constant 0 : index
    %c1 = arith.constant 1 : index
    %23 = vector.load %arg6[%c0_17, %c1] : memref<128x2xf32, #tpu.memory_space<vmem>>, vector<128x1xf32>
    tpu.vector_store %arg6[%c0_17, %c1], %22 {strides = array<i32>} : memref<128x2xf32, #tpu.memory_space<vmem>>, vector<128x1xf32>,
    %c0_18 = arith.constant 0 : index
    %c8_19 = arith.constant 8 : index
    %24 = vector.load %arg4[%c0_18, %c8_19] : memref<1x16xf32, #tpu.memory_space<vmem>>, vector<1x8xf32>
    %25 = vector.broadcast %24 : vector<1x8xf32> to vector<128x8xf32>
    %26 = arith.mulf %17, %25 : vector<128x8xf32>
    %cst_20 = arith.constant dense<0.000000e+00> : vector<128xf32>
    %27 = vector.multi_reduction <add>, %26, %cst_20 [1] : vector<128x8xf32> to vector<128xf32>
    %28 = vector.shape_cast %27 : vector<128xf32> to vector<128x1xf32>
    %c0_21 = arith.constant 0 : index
    %c1_22 = arith.constant 1 : index
    %29 = vector.load %arg7[%c0_21, %c1_22] : memref<128x2xf32, #tpu.memory_space<vmem>>, vector<128x1xf32>
    tpu.vector_store %arg7[%c0_21, %c1_22], %28 {strides = array<i32>} : memref<128x2xf32, #tpu.memory_space<vmem>>, vector<128x1xf32>,
    return
  }
  func.func @transform_0(%arg0: i32) -> (i32, i32) {
    %c0_i32 = arith.constant 0 : i32
    %c0_i32_0 = arith.constant 0 : i32
    %c0_i32_1 = arith.constant 0 : i32
    return %c0_i32, %c0_i32_0 : i32, i32
  }
  func.func @transform_1(%arg0: i32) -> (i32, i32) {
    %c0_i32 = arith.constant 0 : i32
    %c0_i32_0 = arith.constant 0 : i32
    %c0_i32_1 = arith.constant 0 : i32
    return %c0_i32, %c0_i32_0 : i32, i32
  }
  func.func @transform_2(%arg0: i32) -> (i32, i32) {
    %c0_i32 = arith.constant 0 : i32
    %c0_i32_0 = arith.constant 0 : i32
    %c0_i32_1 = arith.constant 0 : i32
    return %c0_i32, %c0_i32_0 : i32, i32
  }
  func.func @transform_3(%arg0: i32) -> (i32, i32) {
    %c0_i32 = arith.constant 0 : i32
    %c0_i32_0 = arith.constant 0 : i32
    %c0_i32_1 = arith.constant 0 : i32
    return %c0_i32, %c0_i32_0 : i32, i32
  }
  func.func @transform_4(%arg0: i32) -> (i32, i32) {
    %c0_i32 = arith.constant 0 : i32
    %c0_i32_0 = arith.constant 0 : i32
    %c0_i32_1 = arith.constant 0 : i32
    return %c0_i32, %c0_i32_0 : i32, i32
  }
  func.func @transform_5(%arg0: i32) -> (i32, i32) {
    %c0_i32 = arith.constant 0 : i32
    %c0_i32_0 = arith.constant 0 : i32
    %c0_i32_1 = arith.constant 0 : i32
    return %c0_i32, %c0_i32_0 : i32, i32
  }
  func.func @transform_6(%arg0: i32) -> (i32, i32) {
    %c0_i32 = arith.constant 0 : i32
    %c0_i32_0 = arith.constant 0 : i32
    %c0_i32_1 = arith.constant 0 : i32
    return %c0_i32, %c0_i32_0 : i32, i32
  }
}

</mosaic_0001>

<bundles_post_ra>
// kernel: tpu_custom_call.1
= control target key start
LH: loop header
LB: loop body
LE: loop exit
PB: predicated region body
PF: predicated region fallthrough
CT: control target
= control target key end

     0   :  { %vm38_vm0 = vcmask 130048   ;;  %vm271_vm1 = vcmask 64512   ;;  %s812_s15 = smov 120   ;;  %vm320_vm2 = vcmask 7168   ;;  %vm559_vm3 = vcmask 15368   ;;  %s1476_s1 = inlined_call_operand.vmem [shape: f32[16,16], index: 1, kind: input, shape index: {}]   ;;  %s1477_s0 = inlined_call_operand.vmem [shape: f32[128,16], index: 0, kind: input, shape index: {}]   ;;  %s1478_s2 = inlined_call_operand.vmem [shape: f32[1,16], index: 2, kind: input, shape index: {}]   ;;  %s1479_s4 = inlined_call_operand.vmem [shape: f32[128,16], index: 4, kind: output, shape index: {0}]   ;;  %s1480_s3 = inlined_call_operand.vmem [shape: f32[1,16], index: 3, kind: input, shape index: {}]   ;;  %s1481_s5 = inlined_call_operand.vmem [shape: f32[128,2], index: 5, kind: output, shape index: {1}]   ;;  %s1482_s6 = inlined_call_operand.vmem [shape: f32[128,2], index: 6, kind: output, shape index: {2}]  }
   0x1   :  { %v36_v0 = vld [vmem:[%s1476_s1] sm:$0xff]  ;;  %v37_v1 = vld [vmem:[%s1476_s1 + $0x8] sm:$0xff]  ;;  %v22_v7 = vld [vmem:[%s1477_s0 + $0x10] sm:$0xff] }
   0x2   :  { %v20_v2 = vld [vmem:[%s1477_s0] sm:$0xff]  ;;  %v805_v3 = vpack.c.bf16 %v37_v1, %v36_v0  ;;  %v21_v5 = vld [vmem:[%s1477_s0 + $0x8] sm:$0xff]  ;;  %v30_v8 = vld [vmem:[%s1477_s0 + $0x50] sm:$0xff] }
   0x3   :  { %781 = vmatprep.mubr.msk.f32.mxu0 %vm38_vm0, %v20_v2  ;;  %v28_v4 = vld [vmem:[%s1477_s0 + $0x40] sm:$0xff]  ;;  %v29_v6 = vld [vmem:[%s1477_s0 + $0x48] sm:$0xff]  ;;  %v23_v9 = vld [vmem:[%s1477_s0 + $0x18] sm:$0xff] }
   0x4   :  { %793 = vmatprep.mubr.msk.f32.mxu1 %vm38_vm0, %v28_v4  ;;  %806 = vmatprep.subr.bf16.mxu0 %v805_v3  ;;  %v31_v10 = vld [vmem:[%s1477_s0 + $0x58] sm:$0xff]  ;;  %v24_v11 = vld [vmem:[%s1477_s0 + $0x20] sm:$0xff]  ;;  %v25_v13 = vld [vmem:[%s1477_s0 + $0x28] sm:$0xff] }
   0x5   :  { %809 = vmatprep.subr.bf16.mxu1 %v805_v3  ;;  %808 = vmatpush3.bf16.msra.mxu0 %v805_v3  ;;  %v32_v12 = vld [vmem:[%s1477_s0 + $0x60] sm:$0xff]  ;;  %v33_v14 = vld [vmem:[%s1477_s0 + $0x68] sm:$0xff]  ;;  %v26_v15 = vld [vmem:[%s1477_s0 + $0x30] sm:$0xff] }
   0x6   :  { %810 = vmatpush3.bf16.msra.mxu1 %v805_v3  ;;  %v27_v16 = vld [vmem:[%s1477_s0 + $0x38] sm:$0xff]  ;;  %v34_v17 = vld [vmem:[%s1477_s0 + $0x70] sm:$0xff]  ;;  %v921_v19 = vld [vmem:[%s1478_s2] ss:$0 sm:$0xff] }
   0x7   :  { %v35_v18 = vld [vmem:[%s1477_s0 + $0x78] sm:$0xff]  ;;  %v956_v31 = vld [vmem:[%s1480_s3] ss:$0 sm:$0xff] }
   0x8   :  { %782 = vmatmul.mubr.msk.f32.vlgmr.msra.gmra.mrb[0].mxu0 %vm38_vm0, %v21_v5 }
   0x9   :  { %794 = vmatmul.mubr.msk.f32.vlgmr.msra.gmra.mrb[0].mxu1 %vm38_vm0, %v29_v6  ;;  %784 = vmatprep.mubr.msk.f32.mxu0 %vm38_vm0, %v22_v7 }
   0xa   :  { %796 = vmatprep.mubr.msk.f32.mxu1 %vm38_vm0, %v30_v8 }
   0xc   :  { %785 = vmatmul.mubr.msk.f32.gmra.mrb[2].mxu0 %vm38_vm0, %v23_v9 }
   0xd   :  { %797 = vmatmul.mubr.msk.f32.gmra.mrb[2].mxu1 %vm38_vm0, %v31_v10  ;;  %787 = vmatprep.mubr.msk.f32.mxu0 %vm38_vm0, %v24_v11 }
   0xe   :  { %799 = vmatprep.mubr.msk.f32.mxu1 %vm38_vm0, %v32_v12 }
  0x10   :  { %788 = vmatmul.mubr.msk.f32.gmra.mrb[4].mxu0 %vm38_vm0, %v25_v13 }
  0x11   :  { %800 = vmatmul.mubr.msk.f32.gmra.mrb[4].mxu1 %vm38_vm0, %v33_v14  ;;  %790 = vmatprep.mubr.msk.f32.mxu0 %vm38_vm0, %v26_v15 }
  0x12   :  { %802 = vmatprep.mubr.msk.f32.mxu1 %vm38_vm0, %v34_v17 }
  0x14   :  { %791 = vmatmul.mubr.msk.f32.gmra.mrb[6].mxu0 %vm38_vm0, %v27_v16 }
  0x15   :  { %803 = vmatmul.mubr.msk.f32.gmra.mrb[6].mxu1 %vm38_vm0, %v35_v18 }
  0xdb   :  { %v783_v20 = vpop.f32.mrb[0].mxu0 }
  0xdc   :  { %v795_v21 = vpop.f32.mrb[0].mxu1  ;;  %233 = vst.msk [vmem:[%s1479_s4 + $0x8] sm:$0xff] %vm38_vm0, %v783_v20  ;;  %v153_v22 = vpop.f32.mrb[1].mxu0  ;;  %v432_v23 = vmul.f32 %v783_v20, %v921_v19  ;;  %v584_v32 = vmul.f32 %v783_v20, %v956_v31 }
  0xdd   :  { %241 = vst.msk [vmem:[%s1479_s4 + $0x48] sm:$0xff] %vm38_vm0, %v795_v21  ;;  %v193_v24 = vpop.f32.mrb[1].mxu1  ;;  %232 = vst.msk [vmem:[%s1479_s4] sm:$0xff] %vm38_vm0, %v153_v22  ;;  %v440_v26 = vmul.f32 %v795_v21, %v921_v19  ;;  %v592_v33 = vmul.f32 %v795_v21, %v956_v31  ;;  %v431_v35 = vmul.f32 %v921_v19, %v153_v22 }
  0xde   :  { %240 = vst.msk [vmem:[%s1479_s4 + $0x40] sm:$0xff] %vm38_vm0, %v193_v24  ;;  %465 = vrot.lane.b32.xlu1 %v432_v23, %s812_s15  ;;  %v275_v25 = vsel %vm271_vm1, %v432_v23, 0.0  ;;  %v439_v38 = vmul.f32 %v921_v19, %v193_v24  ;;  %v363_v41 = vsel %vm271_vm1, %v584_v32, 0.0  ;;  %v344_v45 = vmul.f32 %v956_v31, %v153_v22 }
  0xdf   :  { %276 = vadd.xlane.f32.xlu0 %v275_v25  ;;  %v786_v27 = vpop.f32.mrb[2].mxu0  ;;  %v299_v40 = vsel %vm271_vm1, %v440_v26, 0.0  ;;  %v387_v42 = vsel %vm271_vm1, %v592_v33, 0.0  ;;  %v272_v43 = vsel %vm271_vm1, %v431_v35, 0.0  ;;  %v352_v47 = vmul.f32 %v956_v31, %v193_v24 }
  0xe0   :  { %v798_v28 = vpop.f32.mrb[2].mxu1  ;;  %235 = vst.msk [vmem:[%s1479_s4 + $0x18] sm:$0xff] %vm38_vm0, %v786_v27  ;;  %v947_v29 = vpop.f32.mrb[3].mxu0  ;;  %v296_v44 = vsel %vm271_vm1, %v439_v38, 0.0  ;;  %v360_v46 = vsel %vm271_vm1, %v344_v45, 0.0  ;;  %v434_v49 = vmul.f32 %v786_v27, %v921_v19  ;;  %v586_v51 = vmul.f32 %v786_v27, %v956_v31 }
  0xe1   :  { %243 = vst.msk [vmem:[%s1479_s4 + $0x58] sm:$0xff] %vm38_vm0, %v798_v28  ;;  %v203_v30 = vpop.f32.mrb[3].mxu1  ;;  %234 = vst.msk [vmem:[%s1479_s4 + $0x10] sm:$0xff] %vm38_vm0, %v947_v29  ;;  %v384_v48 = vsel %vm271_vm1, %v352_v47, 0.0  ;;  %v442_v50 = vmul.f32 %v798_v28, %v921_v19  ;;  %v594_v53 = vmul.f32 %v798_v28, %v956_v31  ;;  %v346_v59 = vmul.f32 %v956_v31, %v947_v29 }
  0xe2   :  { %242 = vst.msk [vmem:[%s1479_s4 + $0x50] sm:$0xff] %vm38_vm0, %v203_v30  ;;  %481 = vrot.lane.b32.xlu1 %v440_v26, %s812_s15  ;;  %v441_v52 = vmul.f32 %v921_v19, %v203_v30  ;;  %v354_v61 = vmul.f32 %v956_v31, %v203_v30  ;;  %v281_v62 = vsel %vm271_vm1, %v434_v49, 0.0  ;;  %v369_v1 = vsel %vm271_vm1, %v586_v51, 0.0 }
  0xe3   :  { %v972_v34 = vpop.f32.mrb[4].mxu0  ;;  %v366_v60 = vsel %vm271_vm1, %v346_v59, 0.0  ;;  %v305_v0 = vsel %vm271_vm1, %v442_v50, 0.0  ;;  %v393_v2 = vsel %vm271_vm1, %v594_v53, 0.0  ;;  %v433_v6 = vmul.f32 %v921_v19, %v947_v29 }
  0xe4   :  { %237 = vst.msk [vmem:[%s1479_s4 + $0x28] sm:$0xff] %vm38_vm0, %v972_v34  ;;  %v980_v36 = vpop.f32.mrb[5].mxu0  ;;  %v982_v37 = vpop.f32.mrb[4].mxu1  ;;  %v302_v58 = vsel %vm271_vm1, %v441_v52, 0.0  ;;  %v390_v63 = vsel %vm271_vm1, %v354_v61, 0.0  ;;  %v436_v28 = vmul.f32 %v972_v34, %v921_v19 }
  0xe5   :  { %236 = vst.msk [vmem:[%s1479_s4 + $0x20] sm:$0xff] %vm38_vm0, %v980_v36  ;;  %245 = vst.msk [vmem:[%s1479_s4 + $0x68] sm:$0xff] %vm38_vm0, %v982_v37  ;;  %v996_v39 = vpop.f32.mrb[5].mxu1  ;;  %v435_v4 = vmul.f32 %v921_v19, %v980_v36  ;;  %v1092_v15 = vmul.f32 %v956_v31, %v980_v36  ;;  %v278_v24 = vsel %vm271_vm1, %v433_v6, 0.0  ;;  %v444_v30 = vmul.f32 %v982_v37, %v921_v19 }
  0xe6   :  { %617 = vrot.lane.b32.xlu1 %v584_v32, %s812_s15  ;;  %244 = vst.msk [vmem:[%s1479_s4 + $0x60] sm:$0xff] %vm38_vm0, %v996_v39  ;;  %v443_v5 = vmul.f32 %v921_v19, %v996_v39  ;;  %v1102_v18 = vmul.f32 %v956_v31, %v996_v39  ;;  %v596_v36 = vmul.f32 %v982_v37, %v956_v31 }
  0xe7   :  { %v1023_v54 = vpop.f32.mrb[6].mxu0  ;;  %v284_v11 = vsel %vm271_vm1, %v435_v4, 0.0  ;;  %v372_v17 = vsel %vm271_vm1, %v1092_v15, 0.0 }
  0xe8   :  { %239 = vst.msk [vmem:[%s1479_s4 + $0x38] sm:$0xff] %vm38_vm0, %v1023_v54  ;;  %v1032_v55 = vpop.f32.mrb[7].mxu0  ;;  %v1039_v56 = vpop.f32.mrb[6].mxu1  ;;  %v308_v14 = vsel %vm271_vm1, %v443_v5, 0.0  ;;  %v396_v22 = vsel %vm271_vm1, %v1102_v18, 0.0  ;;  %v1137_v29 = vmul.f32 %v1023_v54, %v956_v31 }
  0xe9   :  { %238 = vst.msk [vmem:[%s1479_s4 + $0x30] sm:$0xff] %vm38_vm0, %v1032_v55  ;;  %247 = vst.msk [vmem:[%s1479_s4 + $0x78] sm:$0xff] %vm38_vm0, %v1039_v56  ;;  %v1046_v57 = vpop.f32.mrb[7].mxu1  ;;  %v437_v32 = vmul.f32 %v921_v19, %v1032_v55 }
  0xea   :  { %633 = vrot.lane.b32.xlu1 %v592_v33, %s812_s15  ;;  %246 = vst.msk [vmem:[%s1479_s4 + $0x70] sm:$0xff] %vm38_vm0, %v1046_v57  ;;  %v588_v33 = vmul.f32 %v972_v34, %v956_v31 }
  0xf5   :  { %463 = vrot.lane.b32.xlu0 %v431_v35, %s812_s15  ;;  %v445_v35 = vmul.f32 %v921_v19, %v1046_v57 }
  0xf9   :  { %479 = vrot.lane.b32.xlu0 %v439_v38, %s812_s15  ;;  %v597_v38 = vmul.f32 %v956_v31, %v1046_v57  ;;  %v375_v57 = vsel %vm271_vm1, %v588_v33, 0.0 }
 0x10e   :  { %300 = vadd.xlane.f32.xlu1 %v299_v40 }
 0x112   :  { %364 = vadd.xlane.f32.xlu1 %v363_v41 }
 0x116   :  { %388 = vadd.xlane.f32.xlu1 %v387_v42 }
 0x118   :  { %273 = vadd.xlane.f32.xlu0 %v272_v43 }
 0x11c   :  { %297 = vadd.xlane.f32.xlu0 %v296_v44  ;;  %v290_v44 = vsel %vm271_vm1, %v437_v32, 0.0 }
 0x120   :  { %361 = vadd.xlane.f32.xlu0 %v360_v46  ;;  %v287_v46 = vsel %vm271_vm1, %v436_v28, 0.0 }
 0x124   :  { %385 = vadd.xlane.f32.xlu0 %v384_v48  ;;  %v1175_v48 = vmul.f32 %v956_v31, %v1032_v55 }
 0x127   :  { %615 = vrot.lane.b32.xlu1 %v344_v45, %s812_s15 }
 0x12b   :  { %631 = vrot.lane.b32.xlu1 %v352_v47, %s812_s15  ;;  %v314_v47 = vsel %vm271_vm1, %v445_v35, 0.0 }
 0x12f   :  { %469 = vrot.lane.b32.xlu1 %v434_v49, %s812_s15 }
 0x133   :  { %485 = vrot.lane.b32.xlu1 %v442_v50, %s812_s15 }
 0x137   :  { %621 = vrot.lane.b32.xlu1 %v586_v51, %s812_s15  ;;  %v311_v51 = vsel %vm271_vm1, %v444_v30, 0.0 }
 0x13a   :  { %483 = vrot.lane.b32.xlu0 %v441_v52, %s812_s15  ;;  %v378_v52 = vsel %vm271_vm1, %v1175_v48, 0.0 }
 0x13b   :  { %637 = vrot.lane.b32.xlu1 %v594_v53, %s812_s15 }
 0x150   :  { %v1078_v7 = vpop.permute.xlu1 %465 }
 0x154   :  { %v1080_v8 = vpop.permute.xlu1 %481 }
 0x158   :  { %v1082_v9 = vpop.permute.xlu1 %617 }
 0x159   :  { %303 = vadd.xlane.f32.xlu0 %v302_v58  ;;  %v402_v58 = vsel %vm271_vm1, %v597_v38, 0.0 }
 0x15c   :  { %v1084_v10 = vpop.permute.xlu1 %633 }
 0x15d   :  { %367 = vadd.xlane.f32.xlu0 %v366_v60  ;;  %v399_v60 = vsel %vm271_vm1, %v596_v36, 0.0 }
 0x15f   :  { %282 = vadd.xlane.f32.xlu1 %v281_v62 }
 0x161   :  { %391 = vadd.xlane.f32.xlu0 %v390_v63 }
 0x163   :  { %306 = vadd.xlane.f32.xlu1 %v305_v0 }
 0x167   :  { %370 = vadd.xlane.f32.xlu1 %v369_v1 }
 0x16b   :  { %394 = vadd.xlane.f32.xlu1 %v393_v2 }
 0x16c   :  { %v277_v3 = vpop.xlane.xlu0 %276 }
 0x16d   :  { %322 = vst.msk [vmem:[%s1481_s5 + $0x8] sm:$0xff] %vm320_vm2, %v277_v3 }
 0x170   :  { %v1087_v12 = vpop.permute.xlu0 %463 }
 0x171   :  { %v511_v63 = vsel %vm271_vm1, %v1087_v12, 0.0 }
 0x174   :  { %v1108_v20 = vpop.permute.xlu0 %479 }
 0x175   :  { %v535_v0 = vsel %vm271_vm1, %v1108_v20, 0.0 }
 0x177   :  { %471 = vrot.lane.b32.xlu0 %v435_v4, %s812_s15 }
 0x17b   :  { %487 = vrot.lane.b32.xlu0 %v443_v5, %s812_s15  ;;  %v438_v5 = vmul.f32 %v1023_v54, %v921_v19  ;;  %v598_v54 = vmul.f32 %v1039_v56, %v956_v31 }
 0x17c   :  { %467 = vrot.lane.b32.xlu1 %v433_v6, %s812_s15 }
 0x180   :  { %619 = vrot.lane.b32.xlu1 %v346_v59, %s812_s15 }
 0x184   :  { %635 = vrot.lane.b32.xlu1 %v354_v61, %s812_s15  ;;  %v514_v61 = vsel %vm271_vm1, %v1078_v7, 0.0 }
 0x19a   :  { %285 = vadd.xlane.f32.xlu0 %v284_v11  ;;  %v446_v11 = vmul.f32 %v1039_v56, %v921_v19 }
 0x19b   :  { %v301_v13 = vpop.xlane.xlu1 %300 }
 0x19c   :  { %330 = vst.msk [vmem:[%s1481_s5 + $0x48] sm:$0xff] %vm320_vm2, %v301_v13 }
 0x19e   :  { %309 = vadd.xlane.f32.xlu0 %v308_v14 }
 0x19f   :  { %v365_v16 = vpop.xlane.xlu1 %364 }
 0x1a0   :  { %409 = vst.msk [vmem:[%s1482_s6 + $0x8] sm:$0xff] %vm320_vm2, %v365_v16 }
 0x1a2   :  { %373 = vadd.xlane.f32.xlu0 %v372_v17 }
 0x1a3   :  { %v389_v21 = vpop.xlane.xlu1 %388 }
 0x1a4   :  { %417 = vst.msk [vmem:[%s1482_s6 + $0x48] sm:$0xff] %vm320_vm2, %v389_v21 }
 0x1a5   :  { %v274_v23 = vpop.xlane.xlu0 %273 }
 0x1a6   :  { %321 = vst.msk [vmem:[%s1481_s5] sm:$0xff] %vm320_vm2, %v274_v23  ;;  %397 = vadd.xlane.f32.xlu0 %v396_v22  ;;  %v293_v22 = vsel %vm271_vm1, %v438_v5, 0.0  ;;  %v317_v23 = vsel %vm271_vm1, %v446_v11, 0.0 }
 0x1a7   :  { %v616_v34 = vpop.permute.xlu1 %615 }
 0x1a8   :  { %279 = vadd.xlane.f32.xlu1 %v278_v24  ;;  %v663_v1 = vsel %vm271_vm1, %v616_v34, 0.0  ;;  %v381_v24 = vsel %vm271_vm1, %v1137_v29, 0.0 }
 0x1a9   :  { %v298_v25 = vpop.xlane.xlu0 %297 }
 0x1aa   :  { %329 = vst.msk [vmem:[%s1481_s5 + $0x40] sm:$0xff] %vm320_vm2, %v298_v25  ;;  %v405_v25 = vsel %vm271_vm1, %v598_v54, 0.0 }
 0x1ab   :  { %v632_v39 = vpop.permute.xlu1 %631 }
 0x1ac   :  { %v687_v2 = vsel %vm271_vm1, %v632_v39, 0.0 }
 0x1ad   :  { %v362_v26 = vpop.xlane.xlu0 %361 }
 0x1ae   :  { %408 = vst.msk [vmem:[%s1482_s6] sm:$0xff] %vm320_vm2, %v362_v26 }
 0x1af   :  { %v470_v40 = vpop.permute.xlu1 %469 }
 0x1b0   :  { %v520_v4 = vsel %vm271_vm1, %v470_v40, 0.0  ;;  %v538_v40 = vsel %vm271_vm1, %v1080_v8, 0.0 }
 0x1b1   :  { %v386_v27 = vpop.xlane.xlu0 %385 }
 0x1b2   :  { %416 = vst.msk [vmem:[%s1482_s6 + $0x40] sm:$0xff] %vm320_vm2, %v386_v27 }
 0x1b3   :  { %v1160_v41 = vpop.permute.xlu1 %485 }
 0x1b5   :  { %v484_v42 = vpop.permute.xlu0 %483 }
 0x1b6   :  { %v541_v7 = vsel %vm271_vm1, %v484_v42, 0.0 }
 0x1b7   :  { %v1162_v43 = vpop.permute.xlu1 %621 }
 0x1b9   :  { %473 = vrot.lane.b32.xlu1 %v436_v28, %s812_s15 }
 0x1bb   :  { %v1169_v45 = vpop.permute.xlu1 %637 }
 0x1bc   :  { %629 = vrot.lane.b32.xlu0 %v1137_v29, %s812_s15 }
 0x1bd   :  { %489 = vrot.lane.b32.xlu1 %v444_v30, %s812_s15 }
 0x1c0   :  { %475 = vrot.lane.b32.xlu0 %v437_v32, %s812_s15 }
 0x1c1   :  { %625 = vrot.lane.b32.xlu1 %v588_v33, %s812_s15 }
 0x1c4   :  { %491 = vrot.lane.b32.xlu0 %v445_v35, %s812_s15 }
 0x1c5   :  { %641 = vrot.lane.b32.xlu1 %v596_v36, %s812_s15 }
 0x1c8   :  { %643 = vrot.lane.b32.xlu0 %v597_v38, %s812_s15 }
 0x1e6   :  { %v304_v37 = vpop.xlane.xlu0 %303 }
 0x1e7   :  { %331 = vst.msk [vmem:[%s1481_s5 + $0x50] sm:$0xff] %vm320_vm2, %v304_v37  ;;  %291 = vadd.xlane.f32.xlu0 %v290_v44  ;;  %v666_v37 = vsel %vm271_vm1, %v1082_v9, 0.0 }
 0x1e9   :  { %288 = vadd.xlane.f32.xlu1 %v287_v46 }
 0x1ea   :  { %v368_v49 = vpop.xlane.xlu0 %367 }
 0x1eb   :  { %410 = vst.msk [vmem:[%s1482_s6 + $0x10] sm:$0xff] %vm320_vm2, %v368_v49  ;;  %315 = vadd.xlane.f32.xlu0 %v314_v47  ;;  %v690_v47 = vsel %vm271_vm1, %v1084_v10, 0.0  ;;  %v544_v49 = vsel %vm271_vm1, %v1160_v41, 0.0  ;;  %v696_v41 = vsel %vm271_vm1, %v1169_v45, 0.0 }
 0x1ec   :  { %v283_v50 = vpop.xlane.xlu1 %282 }
 0x1ed   :  { %324 = vst.msk [vmem:[%s1481_s5 + $0x18] sm:$0xff] %vm320_vm2, %v283_v50  ;;  %312 = vadd.xlane.f32.xlu1 %v311_v51 }
 0x1ee   :  { %v392_v53 = vpop.xlane.xlu0 %391 }
 0x1ef   :  { %418 = vst.msk [vmem:[%s1482_s6 + $0x50] sm:$0xff] %vm320_vm2, %v392_v53  ;;  %379 = vadd.xlane.f32.xlu0 %v378_v52  ;;  %v672_v52 = vsel %vm271_vm1, %v1162_v43, 0.0 }
 0x1f0   :  { %v307_v55 = vpop.xlane.xlu1 %306 }
 0x1f1   :  { %332 = vst.msk [vmem:[%s1481_s5 + $0x58] sm:$0xff] %vm320_vm2, %v307_v55  ;;  %376 = vadd.xlane.f32.xlu1 %v375_v57 }
 0x1f2   :  { %v472_v14 = vpop.permute.xlu0 %471 }
 0x1f3   :  { %403 = vadd.xlane.f32.xlu0 %v402_v58  ;;  %v523_v16 = vsel %vm271_vm1, %v472_v14, 0.0 }
 0x1f4   :  { %v371_v59 = vpop.xlane.xlu1 %370 }
 0x1f5   :  { %411 = vst.msk [vmem:[%s1482_s6 + $0x18] sm:$0xff] %vm320_vm2, %v371_v59  ;;  %400 = vadd.xlane.f32.xlu1 %v399_v60 }
 0x1f6   :  { %v488_v17 = vpop.permute.xlu0 %487 }
 0x1f7   :  { %515 = vadd.xlane.f32.xlu0 %v514_v61  ;;  %v547_v19 = vsel %vm271_vm1, %v488_v17, 0.0 }
 0x1f8   :  { %v395_v62 = vpop.xlane.xlu1 %394 }
 0x1f9   :  { %419 = vst.msk [vmem:[%s1482_s6 + $0x58] sm:$0xff] %vm320_vm2, %v395_v62 }
 0x1fb   :  { %512 = vadd.xlane.f32.xlu0 %v511_v63 }
 0x1fc   :  { %v1217_v3 = vpop.permute.xlu1 %467 }
 0x1fd   :  { %v517_v43 = vsel %vm271_vm1, %v1217_v3, 0.0 }
 0x1ff   :  { %536 = vadd.xlane.f32.xlu0 %v535_v0 }
 0x200   :  { %v620_v6 = vpop.permute.xlu1 %619 }
 0x201   :  { %v669_v12 = vsel %vm271_vm1, %v620_v6, 0.0 }
 0x203   :  { %664 = vadd.xlane.f32.xlu0 %v663_v1 }
 0x204   :  { %v636_v13 = vpop.permute.xlu1 %635 }
 0x206   :  { %623 = vrot.lane.b32.xlu1 %v1092_v15, %s812_s15  ;;  %v693_v15 = vsel %vm271_vm1, %v636_v13, 0.0 }
 0x207   :  { %688 = vadd.xlane.f32.xlu0 %v687_v2 }
 0x20a   :  { %639 = vrot.lane.b32.xlu1 %v1102_v18, %s812_s15 }
 0x20b   :  { %521 = vadd.xlane.f32.xlu0 %v520_v4 }
 0x20e   :  { %477 = vrot.lane.b32.xlu1 %v438_v5, %s812_s15 }
 0x20f   :  { %542 = vadd.xlane.f32.xlu0 %v541_v7 }
 0x212   :  { %493 = vrot.lane.b32.xlu1 %v446_v11, %s812_s15 }
 0x213   :  { %670 = vadd.xlane.f32.xlu0 %v669_v12 }
 0x216   :  { %645 = vrot.lane.b32.xlu1 %v598_v54, %s812_s15 }
 0x217   :  { %694 = vadd.xlane.f32.xlu0 %v693_v15 }
 0x21b   :  { %524 = vadd.xlane.f32.xlu0 %v523_v16 }
 0x21f   :  { %548 = vadd.xlane.f32.xlu0 %v547_v19 }
 0x227   :  { %v286_v18 = vpop.xlane.xlu0 %285 }
 0x228   :  { %325 = vst.msk [vmem:[%s1481_s5 + $0x20] sm:$0xff] %vm320_vm2, %v286_v18 }
 0x22b   :  { %v310_v20 = vpop.xlane.xlu0 %309 }
 0x22c   :  { %333 = vst.msk [vmem:[%s1481_s5 + $0x60] sm:$0xff] %vm320_vm2, %v310_v20 }
 0x22f   :  { %v374_v31 = vpop.xlane.xlu0 %373 }
 0x230   :  { %412 = vst.msk [vmem:[%s1482_s6 + $0x20] sm:$0xff] %vm320_vm2, %v374_v31 }
 0x233   :  { %v398_v56 = vpop.xlane.xlu0 %397 }
 0x234   :  { %420 = vst.msk [vmem:[%s1482_s6 + $0x60] sm:$0xff] %vm320_vm2, %v398_v56 }
 0x235   :  { %v280_v21 = vpop.xlane.xlu1 %279 }
 0x236   :  { %323 = vst.msk [vmem:[%s1481_s5 + $0x10] sm:$0xff] %vm320_vm2, %v280_v21 }
 0x237   :  { %v1263_v26 = vpop.permute.xlu0 %629 }
 0x238   :  { %v684_v13 = vsel %vm271_vm1, %v1263_v26, 0.0 }
 0x239   :  { %v474_v27 = vpop.permute.xlu1 %473 }
 0x23a   :  { %294 = vadd.xlane.f32.xlu1 %v293_v22  ;;  %v526_v45 = vsel %vm271_vm1, %v474_v27, 0.0 }
 0x23b   :  { %v476_v28 = vpop.permute.xlu0 %475 }
 0x23c   :  { %v529_v57 = vsel %vm271_vm1, %v476_v28, 0.0 }
 0x23d   :  { %v490_v30 = vpop.permute.xlu1 %489 }
 0x23e   :  { %318 = vadd.xlane.f32.xlu1 %v317_v23  ;;  %v550_v62 = vsel %vm271_vm1, %v490_v30, 0.0 }
 0x23f   :  { %v492_v32 = vpop.permute.xlu0 %491 }
 0x240   :  { %v553_v59 = vsel %vm271_vm1, %v492_v32, 0.0 }
 0x241   :  { %v626_v33 = vpop.permute.xlu1 %625 }
 0x242   :  { %382 = vadd.xlane.f32.xlu1 %v381_v24  ;;  %v678_v0 = vsel %vm271_vm1, %v626_v33, 0.0 }
 0x243   :  { %v1265_v35 = vpop.permute.xlu0 %643 }
 0x244   :  { %v705_v31 = vsel %vm271_vm1, %v1265_v35, 0.0 }
 0x245   :  { %v1267_v36 = vpop.permute.xlu1 %641 }
 0x246   :  { %406 = vadd.xlane.f32.xlu1 %v405_v25  ;;  %v702_v3 = vsel %vm271_vm1, %v1267_v36, 0.0 }
 0x257   :  { %627 = vrot.lane.b32.xlu1 %v1175_v48, %s812_s15 }
 0x274   :  { %v292_v38 = vpop.xlane.xlu0 %291 }
 0x275   :  { %327 = vst.msk [vmem:[%s1481_s5 + $0x30] sm:$0xff] %vm320_vm2, %v292_v38 }
 0x276   :  { %v289_v29 = vpop.xlane.xlu1 %288 }
 0x277   :  { %326 = vst.msk [vmem:[%s1481_s5 + $0x28] sm:$0xff] %vm320_vm2, %v289_v29 }
 0x278   :  { %v316_v34 = vpop.xlane.xlu0 %315 }
 0x279   :  { %335 = vst.msk [vmem:[%s1481_s5 + $0x70] sm:$0xff] %vm320_vm2, %v316_v34 }
 0x27a   :  { %v313_v39 = vpop.xlane.xlu1 %312 }
 0x27b   :  { %334 = vst.msk [vmem:[%s1481_s5 + $0x68] sm:$0xff] %vm320_vm2, %v313_v39  ;;  %539 = vadd.xlane.f32.xlu1 %v538_v40 }
 0x27c   :  { %v380_v42 = vpop.xlane.xlu0 %379 }
 0x27d   :  { %414 = vst.msk [vmem:[%s1482_s6 + $0x30] sm:$0xff] %vm320_vm2, %v380_v42 }
 0x27e   :  { %v377_v44 = vpop.xlane.xlu1 %376 }
 0x27f   :  { %413 = vst.msk [vmem:[%s1482_s6 + $0x28] sm:$0xff] %vm320_vm2, %v377_v44  ;;  %667 = vadd.xlane.f32.xlu1 %v666_v37 }
 0x280   :  { %v404_v8 = vpop.xlane.xlu0 %403 }
 0x281   :  { %422 = vst.msk [vmem:[%s1482_s6 + $0x70] sm:$0xff] %vm320_vm2, %v404_v8 }
 0x282   :  { %v401_v46 = vpop.xlane.xlu1 %400 }
 0x283   :  { %421 = vst.msk [vmem:[%s1482_s6 + $0x68] sm:$0xff] %vm320_vm2, %v401_v46  ;;  %691 = vadd.xlane.f32.xlu1 %v690_v47 }
 0x284   :  { %v516_v9 = vpop.xlane.xlu0 %515 }
 0x285   :  { %561 = vst.msk [vmem:[%s1481_s5 + $0x8] sm:$0xff] %vm559_vm3, %v516_v9 }
 0x286   :  { %v624_v48 = vpop.permute.xlu1 %623 }
 0x287   :  { %545 = vadd.xlane.f32.xlu1 %v544_v49  ;;  %v675_v10 = vsel %vm271_vm1, %v624_v48, 0.0 }
 0x288   :  { %676 = vadd.xlane.f32.xlu0 %v675_v10  ;;  %v513_v50 = vpop.xlane.xlu0 %512 }
 0x289   :  { %560 = vst.msk [vmem:[%s1481_s5] sm:$0xff] %vm559_vm3, %v513_v50 }
 0x28a   :  { %v640_v51 = vpop.permute.xlu1 %639 }
 0x28b   :  { %673 = vadd.xlane.f32.xlu1 %v672_v52  ;;  %v699_v53 = vsel %vm271_vm1, %v640_v51, 0.0 }
 0x28c   :  { %700 = vadd.xlane.f32.xlu0 %v699_v53  ;;  %v537_v55 = vpop.xlane.xlu0 %536 }
 0x28d   :  { %568 = vst.msk [vmem:[%s1481_s5 + $0x40] sm:$0xff] %vm559_vm3, %v537_v55 }
 0x28e   :  { %v478_v2 = vpop.permute.xlu1 %477 }
 0x28f   :  { %697 = vadd.xlane.f32.xlu1 %v696_v41  ;;  %v532_v5 = vsel %vm271_vm1, %v478_v2, 0.0 }
 0x290   :  { %530 = vadd.xlane.f32.xlu0 %v529_v57  ;;  %v665_v58 = vpop.xlane.xlu0 %664 }
 0x291   :  { %711 = vst.msk [vmem:[%s1482_s6] sm:$0xff] %vm559_vm3, %v665_v58 }
 0x292   :  { %v494_v6 = vpop.permute.xlu1 %493 }
 0x293   :  { %518 = vadd.xlane.f32.xlu1 %v517_v43  ;;  %v556_v11 = vsel %vm271_vm1, %v494_v6, 0.0 }
 0x294   :  { %554 = vadd.xlane.f32.xlu0 %v553_v59  ;;  %v689_v60 = vpop.xlane.xlu0 %688 }
 0x295   :  { %719 = vst.msk [vmem:[%s1482_s6 + $0x40] sm:$0xff] %vm559_vm3, %v689_v60 }
 0x296   :  { %v646_v14 = vpop.permute.xlu1 %645 }
 0x297   :  { %527 = vadd.xlane.f32.xlu1 %v526_v45  ;;  %v708_v54 = vsel %vm271_vm1, %v646_v14, 0.0 }
 0x298   :  { %v522_v61 = vpop.xlane.xlu0 %521 }
 0x299   :  { %563 = vst.msk [vmem:[%s1481_s5 + $0x18] sm:$0xff] %vm559_vm3, %v522_v61 }
 0x29b   :  { %551 = vadd.xlane.f32.xlu1 %v550_v62 }
 0x29c   :  { %v543_v63 = vpop.xlane.xlu0 %542 }
 0x29d   :  { %570 = vst.msk [vmem:[%s1481_s5 + $0x50] sm:$0xff] %vm559_vm3, %v543_v63 }
 0x29f   :  { %679 = vadd.xlane.f32.xlu1 %v678_v0 }
 0x2a0   :  { %v671_v1 = vpop.xlane.xlu0 %670 }
 0x2a1   :  { %713 = vst.msk [vmem:[%s1482_s6 + $0x10] sm:$0xff] %vm559_vm3, %v671_v1 }
 0x2a3   :  { %703 = vadd.xlane.f32.xlu1 %v702_v3 }
 0x2a4   :  { %v695_v4 = vpop.xlane.xlu0 %694 }
 0x2a5   :  { %721 = vst.msk [vmem:[%s1482_s6 + $0x50] sm:$0xff] %vm559_vm3, %v695_v4 }
 0x2a7   :  { %533 = vadd.xlane.f32.xlu1 %v532_v5 }
 0x2a8   :  { %v525_v7 = vpop.xlane.xlu0 %524 }
 0x2a9   :  { %564 = vst.msk [vmem:[%s1481_s5 + $0x20] sm:$0xff] %vm559_vm3, %v525_v7 }
 0x2ab   :  { %557 = vadd.xlane.f32.xlu1 %v556_v11 }
 0x2ac   :  { %v549_v12 = vpop.xlane.xlu0 %548 }
 0x2ad   :  { %572 = vst.msk [vmem:[%s1481_s5 + $0x60] sm:$0xff] %vm559_vm3, %v549_v12 }
 0x2af   :  { %685 = vadd.xlane.f32.xlu1 %v684_v13 }
 0x2b3   :  { %709 = vadd.xlane.f32.xlu1 %v708_v54 }
 0x2c7   :  { %v295_v15 = vpop.xlane.xlu1 %294 }
 0x2c8   :  { %328 = vst.msk [vmem:[%s1481_s5 + $0x38] sm:$0xff] %vm320_vm2, %v295_v15 }
 0x2cb   :  { %v319_v16 = vpop.xlane.xlu1 %318 }
 0x2cc   :  { %336 = vst.msk [vmem:[%s1481_s5 + $0x78] sm:$0xff] %vm320_vm2, %v319_v16 }
 0x2cf   :  { %v383_v17 = vpop.xlane.xlu1 %382 }
 0x2d0   :  { %415 = vst.msk [vmem:[%s1482_s6 + $0x38] sm:$0xff] %vm320_vm2, %v383_v17 }
 0x2d3   :  { %v407_v19 = vpop.xlane.xlu1 %406 }
 0x2d4   :  { %423 = vst.msk [vmem:[%s1482_s6 + $0x78] sm:$0xff] %vm320_vm2, %v407_v19 }
 0x2d7   :  { %v628_v18 = vpop.permute.xlu1 %627 }
 0x2d8   :  { %v681_v20 = vsel %vm271_vm1, %v628_v18, 0.0 }
 0x2d9   :  { %682 = vadd.xlane.f32.xlu0 %v681_v20 }
 0x2dd   :  { %706 = vadd.xlane.f32.xlu0 %v705_v31 }
 0x308   :  { %v540_v56 = vpop.xlane.xlu1 %539 }
 0x309   :  { %569 = vst.msk [vmem:[%s1481_s5 + $0x48] sm:$0xff] %vm559_vm3, %v540_v56 }
 0x30c   :  { %v668_v21 = vpop.xlane.xlu1 %667 }
 0x30d   :  { %712 = vst.msk [vmem:[%s1482_s6 + $0x8] sm:$0xff] %vm559_vm3, %v668_v21 }
 0x310   :  { %v692_v22 = vpop.xlane.xlu1 %691 }
 0x311   :  { %720 = vst.msk [vmem:[%s1482_s6 + $0x48] sm:$0xff] %vm559_vm3, %v692_v22 }
 0x314   :  { %v546_v23 = vpop.xlane.xlu1 %545 }
 0x315   :  { %571 = vst.msk [vmem:[%s1481_s5 + $0x58] sm:$0xff] %vm559_vm3, %v546_v23  ;;  %v677_v24 = vpop.xlane.xlu0 %676 }
 0x316   :  { %715 = vst.msk [vmem:[%s1482_s6 + $0x20] sm:$0xff] %vm559_vm3, %v677_v24 }
 0x318   :  { %v674_v25 = vpop.xlane.xlu1 %673 }
 0x319   :  { %714 = vst.msk [vmem:[%s1482_s6 + $0x18] sm:$0xff] %vm559_vm3, %v674_v25  ;;  %v701_v26 = vpop.xlane.xlu0 %700 }
 0x31a   :  { %723 = vst.msk [vmem:[%s1482_s6 + $0x60] sm:$0xff] %vm559_vm3, %v701_v26 }
 0x31c   :  { %v698_v27 = vpop.xlane.xlu1 %697 }
 0x31d   :  { %722 = vst.msk [vmem:[%s1482_s6 + $0x58] sm:$0xff] %vm559_vm3, %v698_v27  ;;  %v531_v28 = vpop.xlane.xlu0 %530 }
 0x31e   :  { %566 = vst.msk [vmem:[%s1481_s5 + $0x30] sm:$0xff] %vm559_vm3, %v531_v28 }
 0x320   :  { %v519_v30 = vpop.xlane.xlu1 %518 }
 0x321   :  { %562 = vst.msk [vmem:[%s1481_s5 + $0x10] sm:$0xff] %vm559_vm3, %v519_v30  ;;  %v555_v32 = vpop.xlane.xlu0 %554 }
 0x322   :  { %574 = vst.msk [vmem:[%s1481_s5 + $0x70] sm:$0xff] %vm559_vm3, %v555_v32 }
 0x324   :  { %v528_v33 = vpop.xlane.xlu1 %527 }
 0x325   :  { %565 = vst.msk [vmem:[%s1481_s5 + $0x28] sm:$0xff] %vm559_vm3, %v528_v33 }
 0x328   :  { %v552_v35 = vpop.xlane.xlu1 %551 }
 0x329   :  { %573 = vst.msk [vmem:[%s1481_s5 + $0x68] sm:$0xff] %vm559_vm3, %v552_v35 }
 0x32c   :  { %v680_v36 = vpop.xlane.xlu1 %679 }
 0x32d   :  { %716 = vst.msk [vmem:[%s1482_s6 + $0x28] sm:$0xff] %vm559_vm3, %v680_v36 }
 0x330   :  { %v704_v38 = vpop.xlane.xlu1 %703 }
 0x331   :  { %724 = vst.msk [vmem:[%s1482_s6 + $0x68] sm:$0xff] %vm559_vm3, %v704_v38 }
 0x334   :  { %v534_v29 = vpop.xlane.xlu1 %533 }
 0x335   :  { %567 = vst.msk [vmem:[%s1481_s5 + $0x38] sm:$0xff] %vm559_vm3, %v534_v29 }
 0x338   :  { %v558_v34 = vpop.xlane.xlu1 %557 }
 0x339   :  { %575 = vst.msk [vmem:[%s1481_s5 + $0x78] sm:$0xff] %vm559_vm3, %v558_v34 }
 0x33c   :  { %v686_v39 = vpop.xlane.xlu1 %685 }
 0x33d   :  { %718 = vst.msk [vmem:[%s1482_s6 + $0x38] sm:$0xff] %vm559_vm3, %v686_v39 }
 0x340   :  { %v710_v40 = vpop.xlane.xlu1 %709 }
 0x341   :  { %726 = vst.msk [vmem:[%s1482_s6 + $0x78] sm:$0xff] %vm559_vm3, %v710_v40 }
 0x366   :  { %v683_v42 = vpop.xlane.xlu0 %682 }
 0x367   :  { %717 = vst.msk [vmem:[%s1482_s6 + $0x30] sm:$0xff] %vm559_vm3, %v683_v42 }
 0x36a   :  { %v707_v44 = vpop.xlane.xlu0 %706 }
 0x36b   :  { %725 = vst.msk [vmem:[%s1482_s6 + $0x70] sm:$0xff] %vm559_vm3, %v707_v44 }

</bundles_post_ra>
